<compile_context>
chip_gen: v5e
topology: v5e:2x2
jax: 0.10.0
libtpu: 0.0.40
codegen_flags: <defaults>
</compile_context>

<pallas_src>
import functools

import jax
import jax.numpy as jnp
from jax.experimental import pallas as pl
from jax.experimental.pallas import tpu as pltpu


def _round_up(x, m):
    return (x + m - 1) // m * m


def _ce_kernel(logits_ref, target_ref, weights_ref, out_ref,
               m_ref, l_ref, p_ref, *, num_classes, mask_classes):
    j = pl.program_id(1)

    @pl.when(j == 0)
    def _init():
        m_ref[...] = jnp.full_like(m_ref, -jnp.inf)
        l_ref[...] = jnp.zeros_like(l_ref)
        p_ref[...] = jnp.zeros_like(p_ref)

    logits = logits_ref[...].astype(jnp.float32)           # (TM, TC) upcast in-kernel
    tgt = target_ref[...]                                   # (TM, 1) int32
    tm, tc = logits.shape

    # Global class index of each lane in this class tile.
    lane = jax.lax.broadcasted_iota(jnp.int32, (tm, tc), 1) + j * tc
    if mask_classes:  # static: only emitted when C % TC != 0
        logits = jnp.where(lane < num_classes, logits, -jnp.inf)

    # Online (streaming) log-sum-exp across class tiles.
    m_prev = m_ref[...]                                      # (TM, 1)
    m_new = jnp.maximum(m_prev, jnp.max(logits, axis=1, keepdims=True))
    alpha = jnp.exp(m_prev - m_new)                          # 0 at j == 0 (m_prev=-inf)
    l_ref[...] = l_ref[...] * alpha + jnp.sum(jnp.exp(logits - m_new),
                                              axis=1, keepdims=True)
    m_ref[...] = m_new

    # Accumulate logits[b, target[b]]; the target lands in exactly one class tile.
    p_ref[...] += jnp.sum(jnp.where(lane == tgt, logits, 0.0),
                          axis=1, keepdims=True)

    @pl.when(j == pl.num_programs(1) - 1)
    def _finalize():
        w = weights_ref[...].astype(jnp.float32)             # (TM, 1)
        lse = m_ref[...] + jnp.log(l_ref[...])
        out_ref[...] = (lse - p_ref[...]) * w                # (TM, 1)


def _choose_tiles(batch, num_classes, itemsize):
    # Class-tile width: full C if modest, else 128-multiple chunks (streamed LSE).
    max_tc = 2048
    tc = num_classes if num_classes <= max_tc else max_tc
    # Row-tile height: keep the double-buffered native-dtype logits tile plus the
    # f32 working set comfortably inside every generation's scoped-VMEM default
    # (v5e 16 MiB / v6e 32 MiB / v7x 32-of-64 MiB).
    budget = 2 * 1024 * 1024                  # bytes for one (pre-upcast) logits buffer
    rows = budget // max(1, tc * itemsize)
    tm = max(8, min(256, (rows // 8) * 8))
    tm = min(tm, _round_up(batch, 8))
    return tm, tc


def cross_entropy_loss(logits, target, weights=None, aggregate="mean",
                       block_rows=None, block_cols=None):
    """Pallas TPU weighted cross entropy.

    logits:  (B, C) float (any float dtype; streamed natively, upcast in-kernel)
    target:  (B,) or (B, 1) int
    weights: optional (B,) or (B, 1) float instance weights
    aggregate: 'sum' | 'mean' | None
    """
    assert aggregate in ("sum", "mean", None)
    logits = jnp.asarray(logits)
    B, C = logits.shape
    target = jnp.asarray(target).reshape(B, 1).astype(jnp.int32)
    if weights is None:
        weights = jnp.ones((B,), dtype=jnp.float32)
    weights = jnp.asarray(weights).reshape(B, 1).astype(jnp.float32)

    itemsize = jnp.dtype(logits.dtype).itemsize
    tm, tc = _choose_tiles(B, C, itemsize)
    if block_rows is not None:
        tm = int(block_rows)
    if block_cols is not None:
        tc = int(block_cols)
    assert tm % 8 == 0, "row tile must be a multiple of 8 sublanes"
    assert tc == C or tc % 128 == 0, "class tile must be C or a multiple of 128 lanes"

    n_row = pl.cdiv(B, tm)
    n_col = pl.cdiv(C, tc)
    mask_classes = (C % tc) != 0

    kernel = functools.partial(_ce_kernel, num_classes=C, mask_classes=mask_classes)

    # Explicit VMEM budget: double-buffered native-dtype logits tile + f32 working
    # set (upcast / exp / select temporaries) + lane-padded aux blocks & scratch.
    logits_buf = 2 * tm * tc * itemsize
    work = 3 * tm * tc * 4
    aux = 10 * tm * 128 * 4
    vmem_limit = int(min(64 << 20, max(16 << 20, logits_buf + work + aux + (2 << 20))))

    out = pl.pallas_call(
        kernel,
        out_shape=jax.ShapeDtypeStruct((B, 1), jnp.float32),
        grid=(n_row, n_col),
        in_specs=[
            pl.BlockSpec((tm, tc), lambda i, j: (i, j)),
            pl.BlockSpec((tm, 1), lambda i, j: (i, 0)),
            pl.BlockSpec((tm, 1), lambda i, j: (i, 0)),
        ],
        out_specs=pl.BlockSpec((tm, 1), lambda i, j: (i, 0)),
        scratch_shapes=[
            pltpu.VMEM((tm, 1), jnp.float32),   # running max
            pltpu.VMEM((tm, 1), jnp.float32),   # running exp-sum
            pltpu.VMEM((tm, 1), jnp.float32),   # picked logit
        ],
        compiler_params=pltpu.CompilerParams(
            dimension_semantics=("parallel", "arbitrary"),
            vmem_limit_bytes=vmem_limit,
        ),
    )(logits, target, weights)

    per_row = out[:, 0]                        # (B,) per-instance weighted loss
    if aggregate == "sum":
        return per_row.sum()
    if aggregate == "mean":
        return per_row.mean()                  # torch module uses .mean() over batch
    return per_row


class CrossEntropyLoss:
    """Cross entropy with instance-wise weights (Pallas TPU)."""

    def __init__(self, aggregate="mean"):
        assert aggregate in ("sum", "mean", None)
        self.aggregate = aggregate

    def __call__(self, input, target, weights=None):
        return cross_entropy_loss(input, target, weights, aggregate=self.aggregate)


def _reference(logits, target, weights, aggregate):
    logits32 = jnp.asarray(logits).astype(jnp.float32)
    lse = jax.scipy.special.logsumexp(logits32, axis=1)
    picked = jnp.take_along_axis(logits32, jnp.asarray(target).reshape(-1, 1),
                                 axis=1)[:, 0]
    loss = lse - picked
    if weights is not None:
        loss = loss * jnp.asarray(weights).reshape(-1).astype(jnp.float32)
    if aggregate == "sum":
        return loss.sum()
    if aggregate == "mean":
        return loss.mean()
    return loss


if __name__ == "__main__":
    key = jax.random.PRNGKey(0)
    k1, k2, k3 = jax.random.split(key, 3)

    # Small shapes consistent with the module: (batch, num_classes) = (8, 32).
    B, C = 8, 32
    logits = jax.random.normal(k1, (B, C), dtype=jnp.float32)
    target = jax.random.randint(k2, (B,), 0, C, dtype=jnp.int32)
    weights = jax.random.uniform(k3, (B,), dtype=jnp.float32)

    for agg in ("mean", "sum", None):
        out = jax.block_until_ready(CrossEntropyLoss(aggregate=agg)(logits, target, weights))
        ref = _reference(logits, target, weights, agg)
        assert jnp.allclose(out, ref, atol=1e-5, rtol=1e-5), (agg, out, ref)

    # No-weights path.
    out = jax.block_until_ready(CrossEntropyLoss(aggregate="mean")(logits, target))
    ref = _reference(logits, target, None, "mean")
    assert jnp.allclose(out, ref, atol=1e-5, rtol=1e-5), (out, ref)

    # Exercise the tiled path: multi-tile rows (with a ragged last row tile), multi-
    # tile classes with in-kernel class masking (C % TC != 0), and native bf16
    # streaming (upcast happens inside the kernel).
    B2, C2 = 300, 200
    l2 = jax.random.normal(k1, (B2, C2), dtype=jnp.bfloat16)
    t2 = jax.random.randint(k2, (B2,), 0, C2, dtype=jnp.int32)
    w2 = jax.random.uniform(k3, (B2,), dtype=jnp.float32)
    vec = jax.block_until_ready(
        cross_entropy_loss(l2, t2, w2, aggregate=None, block_rows=64, block_cols=128))
    ref_vec = _reference(l2, t2, w2, None)
    assert vec.shape == (B2,)
    assert jnp.allclose(vec, ref_vec, atol=2e-3, rtol=2e-3)

    print("KERNEL_OK")
</pallas_src>

<mosaic_0001>
module attributes {stable_mosaic.version = 11 : i64} {
  func.func @_ce_kernel(%arg0: i32, %arg1: i32, %arg2: memref<8x32xf32, #tpu.memory_space<vmem>>, %arg3: memref<8x1xi32, #tpu.memory_space<vmem>>, %arg4: memref<8x1xf32, #tpu.memory_space<vmem>>, %arg5: memref<8x1xf32, #tpu.memory_space<vmem>>, %arg6: memref<8x1xf32, #tpu.memory_space<vmem>>, %arg7: memref<8x1xf32, #tpu.memory_space<vmem>>, %arg8: memref<8x1xf32, #tpu.memory_space<vmem>>) attributes {dimension_semantics = [#tpu.dimension_semantics<parallel>, #tpu.dimension_semantics<arbitrary>], iteration_bounds = array<i64: 1, 1>, scalar_prefetch = 0 : i64, scratch_operands = 3 : i64, tpu.core_type = #tpu.core_type<tc>, window_params = [{transform_indices = @transform_0, window_bounds = array<i64: 8, 32>}, {transform_indices = @transform_1, window_bounds = array<i64: 8, 1>}, {transform_indices = @transform_2, window_bounds = array<i64: 8, 1>}, {transform_indices = @transform_3, window_bounds = array<i64: 8, 1>}]} {
    %c0_i32 = arith.constant 0 : i32
    %0 = arith.cmpi eq, %arg1, %c0_i32 : i32
    %1 = arith.extui %0 : i1 to i32
    %c0_i32_0 = arith.constant 0 : i32
    %2 = arith.cmpi ne, %1, %c0_i32_0 : i32
    scf.if %2 {
      %cst_21 = arith.constant 0xFF800000 : f32
      %37 = vector.broadcast %cst_21 : f32 to vector<8x1xf32>
      %c0_22 = arith.constant 0 : index
      %c0_23 = arith.constant 0 : index
      %38 = vector.load %arg6[%c0_22, %c0_23] : memref<8x1xf32, #tpu.memory_space<vmem>>, vector<8x1xf32>
      tpu.vector_store %arg6[%c0_22, %c0_23], %37 {strides = array<i32>} : memref<8x1xf32, #tpu.memory_space<vmem>>, vector<8x1xf32>,
      %cst_24 = arith.constant 0.000000e+00 : f32
      %39 = vector.broadcast %cst_24 : f32 to vector<8x1xf32>
      %c0_25 = arith.constant 0 : index
      %c0_26 = arith.constant 0 : index
      %40 = vector.load %arg7[%c0_25, %c0_26] : memref<8x1xf32, #tpu.memory_space<vmem>>, vector<8x1xf32>
      tpu.vector_store %arg7[%c0_25, %c0_26], %39 {strides = array<i32>} : memref<8x1xf32, #tpu.memory_space<vmem>>, vector<8x1xf32>,
      %cst_27 = arith.constant 0.000000e+00 : f32
      %41 = vector.broadcast %cst_27 : f32 to vector<8x1xf32>
      %c0_28 = arith.constant 0 : index
      %c0_29 = arith.constant 0 : index
      %42 = vector.load %arg8[%c0_28, %c0_29] : memref<8x1xf32, #tpu.memory_space<vmem>>, vector<8x1xf32>
      tpu.vector_store %arg8[%c0_28, %c0_29], %41 {strides = array<i32>} : memref<8x1xf32, #tpu.memory_space<vmem>>, vector<8x1xf32>,
    } else {
    }
    %c0 = arith.constant 0 : index
    %c0_1 = arith.constant 0 : index
    %3 = vector.load %arg2[%c0, %c0_1] : memref<8x32xf32, #tpu.memory_space<vmem>>, vector<8x32xf32>
    %c0_2 = arith.constant 0 : index
    %c0_3 = arith.constant 0 : index
    %4 = vector.load %arg3[%c0_2, %c0_3] : memref<8x1xi32, #tpu.memory_space<vmem>>, vector<8x1xi32>
    %5 = tpu.iota {dimensions = array<i32: 1>} : vector<8x32xi32>
    %c32_i32 = arith.constant 32 : i32
    %6 = arith.muli %arg1, %c32_i32 : i32
    %7 = vector.broadcast %6 : i32 to vector<8x32xi32>
    %8 = arith.addi %5, %7 : vector<8x32xi32>
    %c0_4 = arith.constant 0 : index
    %c0_5 = arith.constant 0 : index
    %9 = vector.load %arg6[%c0_4, %c0_5] : memref<8x1xf32, #tpu.memory_space<vmem>>, vector<8x1xf32>
    %cst = arith.constant dense<0xFF800000> : vector<8xf32>
    %10 = vector.multi_reduction <maximumf>, %3, %cst [1] : vector<8x32xf32> to vector<8xf32>
    %11 = vector.shape_cast %10 : vector<8xf32> to vector<8x1xf32>
    %12 = arith.maximumf %9, %11 : vector<8x1xf32>
    %13 = arith.subf %9, %12 : vector<8x1xf32>
    %14 = math.exp %13 : vector<8x1xf32>
    %c0_6 = arith.constant 0 : index
    %c0_7 = arith.constant 0 : index
    %15 = vector.load %arg7[%c0_6, %c0_7] : memref<8x1xf32, #tpu.memory_space<vmem>>, vector<8x1xf32>
    %16 = arith.mulf %15, %14 : vector<8x1xf32>
    %17 = vector.broadcast %12 : vector<8x1xf32> to vector<8x32xf32>
    %18 = arith.subf %3, %17 : vector<8x32xf32>
    %19 = math.exp %18 : vector<8x32xf32>
    %cst_8 = arith.constant dense<0.000000e+00> : vector<8xf32>
    %20 = vector.multi_reduction <add>, %19, %cst_8 [1] : vector<8x32xf32> to vector<8xf32>
    %21 = vector.shape_cast %20 : vector<8xf32> to vector<8x1xf32>
    %22 = arith.addf %16, %21 : vector<8x1xf32>
    %c0_9 = arith.constant 0 : index
    %c0_10 = arith.constant 0 : index
    %23 = vector.load %arg7[%c0_9, %c0_10] : memref<8x1xf32, #tpu.memory_space<vmem>>, vector<8x1xf32>
    tpu.vector_store %arg7[%c0_9, %c0_10], %22 {strides = array<i32>} : memref<8x1xf32, #tpu.memory_space<vmem>>, vector<8x1xf32>,
    %c0_11 = arith.constant 0 : index
    %c0_12 = arith.constant 0 : index
    %24 = vector.load %arg6[%c0_11, %c0_12] : memref<8x1xf32, #tpu.memory_space<vmem>>, vector<8x1xf32>
    tpu.vector_store %arg6[%c0_11, %c0_12], %12 {strides = array<i32>} : memref<8x1xf32, #tpu.memory_space<vmem>>, vector<8x1xf32>,
    %c0_13 = arith.constant 0 : index
    %c0_14 = arith.constant 0 : index
    %25 = vector.load %arg8[%c0_13, %c0_14] : memref<8x1xf32, #tpu.memory_space<vmem>>, vector<8x1xf32>
    %26 = vector.broadcast %4 : vector<8x1xi32> to vector<8x32xi32>
    %27 = arith.cmpi eq, %8, %26 : vector<8x32xi32>
    %cst_15 = arith.constant 0.000000e+00 : f32
    %28 = vector.broadcast %cst_15 : f32 to vector<8x32xf32>
    %29 = arith.select %27, %3, %28 : vector<8x32xi1>, vector<8x32xf32>
    %cst_16 = arith.constant dense<0.000000e+00> : vector<8xf32>
    %30 = vector.multi_reduction <add>, %29, %cst_16 [1] : vector<8x32xf32> to vector<8xf32>
    %31 = vector.shape_cast %30 : vector<8xf32> to vector<8x1xf32>
    %32 = arith.addf %25, %31 : vector<8x1xf32>
    %c0_17 = arith.constant 0 : index
    %c0_18 = arith.constant 0 : index
    %33 = vector.load %arg8[%c0_17, %c0_18] : memref<8x1xf32, #tpu.memory_space<vmem>>, vector<8x1xf32>
    tpu.vector_store %arg8[%c0_17, %c0_18], %32 {strides = array<i32>} : memref<8x1xf32, #tpu.memory_space<vmem>>, vector<8x1xf32>,
    %c0_i32_19 = arith.constant 0 : i32
    %34 = arith.cmpi eq, %arg1, %c0_i32_19 : i32
    %35 = arith.extui %34 : i1 to i32
    %c0_i32_20 = arith.constant 0 : i32
    %36 = arith.cmpi ne, %35, %c0_i32_20 : i32
    scf.if %36 {
      %c0_21 = arith.constant 0 : index
      %c0_22 = arith.constant 0 : index
      %37 = vector.load %arg4[%c0_21, %c0_22] : memref<8x1xf32, #tpu.memory_space<vmem>>, vector<8x1xf32>
      %c0_23 = arith.constant 0 : index
      %c0_24 = arith.constant 0 : index
      %38 = vector.load %arg6[%c0_23, %c0_24] : memref<8x1xf32, #tpu.memory_space<vmem>>, vector<8x1xf32>
      %c0_25 = arith.constant 0 : index
      %c0_26 = arith.constant 0 : index
      %39 = vector.load %arg7[%c0_25, %c0_26] : memref<8x1xf32, #tpu.memory_space<vmem>>, vector<8x1xf32>
      %40 = math.log %39 : vector<8x1xf32>
      %41 = arith.addf %38, %40 : vector<8x1xf32>
      %c0_27 = arith.constant 0 : index
      %c0_28 = arith.constant 0 : index
      %42 = vector.load %arg8[%c0_27, %c0_28] : memref<8x1xf32, #tpu.memory_space<vmem>>, vector<8x1xf32>
      %43 = arith.subf %41, %42 : vector<8x1xf32>
      %44 = arith.mulf %43, %37 : vector<8x1xf32>
      %c0_29 = arith.constant 0 : index
      %c0_30 = arith.constant 0 : index
      %45 = vector.load %arg5[%c0_29, %c0_30] : memref<8x1xf32, #tpu.memory_space<vmem>>, vector<8x1xf32>
      tpu.vector_store %arg5[%c0_29, %c0_30], %44 {strides = array<i32>} : memref<8x1xf32, #tpu.memory_space<vmem>>, vector<8x1xf32>,
    } else {
    }
    return
  }
  func.func @transform_0(%arg0: i32, %arg1: i32) -> (i32, i32) {
    %c0_i32 = arith.constant 0 : i32
    return %arg0, %arg1 : i32, i32
  }
  func.func @transform_1(%arg0: i32, %arg1: i32) -> (i32, i32) {
    %c0_i32 = arith.constant 0 : i32
    %c0_i32_0 = arith.constant 0 : i32
    return %arg0, %c0_i32 : i32, i32
  }
  func.func @transform_2(%arg0: i32, %arg1: i32) -> (i32, i32) {
    %c0_i32 = arith.constant 0 : i32
    %c0_i32_0 = arith.constant 0 : i32
    return %arg0, %c0_i32 : i32, i32
  }
  func.func @transform_3(%arg0: i32, %arg1: i32) -> (i32, i32) {
    %c0_i32 = arith.constant 0 : i32
    %c0_i32_0 = arith.constant 0 : i32
    return %arg0, %c0_i32 : i32, i32
  }
}

</mosaic_0001>

<bundles_post_ra>
// kernel: tpu_custom_call.1
= control target key start
LH: loop header
LB: loop body
LE: loop exit
PB: predicated region body
PF: predicated region fallthrough
CT: control target
= control target key end

     0   :  { %vm30_vm0 = vcmask 261120   ;;  %vm18_vm1 = vcmask 7168   ;;  %v94_v1 = vmov -inf   ;;  %v95_v3 = vmov 0   ;;  %s139_s0 = inlined_call_operand.vmem [shape: f32[8,32], index: 0, kind: input, shape index: {}]   ;;  %s140_s1 = inlined_call_operand.vmem [shape: s32[8,1], index: 1, kind: input, shape index: {}]   ;;  %s141_s2 = inlined_call_operand.vmem [shape: f32[8,1], index: 2, kind: input, shape index: {}]   ;;  %s142_s3 = inlined_call_operand.vmem [shape: f32[8,1], index: 3, kind: output, shape index: {}]  }
   0x1   :  { %v22_v0 = vld [vmem:[%s139_s0] sm:$0xff]  ;;  %19 = vst.msk [vmem:[#allocation2] sm:$0xff] %vm18_vm1, %v94_v1  ;;  %86 = vset.pattern.permute.xlu0 %v95_v3  ;;  %87 = vset.pattern.permute.xlu1 %v95_v3  ;;  %v96_v4 = vmov 0.0   ;;  %v24_v10 = vlaneseq }
   0x2   :  { %v31_v2 = vsel %vm30_vm0, %v22_v0, -inf  ;;  %20 = vst.msk [vmem:[#allocation3] sm:$0xff] %vm18_vm1, %v96_v4  ;;  %v23_v5 = vld [vmem:[%s140_s1] sm:$0xff] }
   0x3   :  { %32 = vmax.xlane.f32.xlu0 %v31_v2  ;;  %21 = vst.msk [vmem:[#allocation4] sm:$0xff] %vm18_vm1, %v96_v4  ;;  %57 = vperm.xlu1 %87, %v23_v5   ;;  %v25_v12 = vand.u32 127, %v24_v10  ;;  %v69_v35 = vld [vmem:[%s141_s2] sm:$0xff] }
   0x8   :  { %v29_v6 = vld [vmem:[#allocation2] sm:$0xff] }
   0x9   :  { %v38_v25 = vld [vmem:[#allocation3] sm:$0xff] }
   0xa   :  { %v55_v20 = vld [vmem:[#allocation4] sm:$0xff] }
  0x75   :  { %v58_v11 = vpop.permute.xlu1 %57 }
  0x76   :  { %v33_v7 = vpop.xlane.xlu0 %32  ;;  %vm59_vm2 = vcmp.eq.s32.totalorder %v25_v12, %v58_v11 }
  0x77   :  { %v34_v8 = vmax.f32 %v29_v6, %v33_v7  ;;  %v60_v13 = vsel %vm59_vm2, %v22_v0, 0.0 }
  0x78   :  { %v61_v14 = vsel %vm30_vm0, %v60_v13, 0.0 }
  0x79   :  { %v35_v9 = vsub.f32 %v29_v6, %v34_v8  ;;  %54 = vst.msk [vmem:[#allocation2] sm:$0xff] %vm18_vm1, %v34_v8  ;;  %42 = vperm.xlu0 %86, %v34_v8   ;;  %62 = vadd.xlane.f32.xlu2 %v61_v14 }
  0x7b   :  { %v36_v23 = vmul.f32 1.442695, %v35_v9 }
  0x80   :  { %v70_v32 = vld [vmem:[#allocation2] sm:$0xff] }
  0xeb   :  { %v43_v15 = vpop.permute.xlu0 %42 }
  0xec   :  { %v45_v16 = vsub.f32 %v22_v0, %v43_v15  ;;  %v63_v21 = vpop.xlane.xlu2 %62 }
  0xed   :  { %v64_v22 = vadd.f32 %v63_v21, %v55_v20 }
  0xee   :  { %v46_v17 = vmul.f32 1.442695, %v45_v16 }
  0xef   :  { %65 = vst.msk [vmem:[#allocation4] sm:$0xff] %vm18_vm1, %v64_v22 }
  0xf0   :  { %88 = vpow2.f32 %v46_v17 }
  0xf1   :  { %90 = vpow2.f32 %v36_v23 }
  0xf6   :  { %v89_v18 = vpop.eup %88  ;;  %v75_v33 = vld [vmem:[#allocation4] sm:$0xff] }
  0xf7   :  { %v48_v19 = vsel %vm30_vm0, %v89_v18, 0.0  ;;  %v91_v24 = vpop.eup %90 }
  0xf8   :  { %49 = vadd.xlane.f32.xlu1 %v48_v19  ;;  %v39_v26 = vmul.f32 %v91_v24, %v38_v25 }
 0x16b   :  { %v50_v27 = vpop.xlane.xlu1 %49 }
 0x16c   :  { %v51_v28 = vadd.f32 %v50_v27, %v39_v26 }
 0x16e   :  { %53 = vst.msk [vmem:[#allocation3] sm:$0xff] %vm18_vm1, %v51_v28 }
 0x175   :  { %v71_v29 = vld [vmem:[#allocation3] sm:$0xff] }
 0x176   :  { %92 = vlog2.f32 %v71_v29 }
 0x17c   :  { %v93_v30 = vpop.eup %92 }
 0x17d   :  { %v73_v31 = vmul.f32 0.6931472, %v93_v30 }
 0x17f   :  { %v74_v34 = vadd.f32 %v73_v31, %v70_v32 }
 0x181   :  { %v76_v36 = vsub.f32 %v74_v34, %v75_v33 }
 0x183   :  { %v77_v37 = vmul.f32 %v76_v36, %v69_v35 }
 0x185   :  { %78 = vst.msk [vmem:[%s142_s3] sm:$0xff] %vm18_vm1, %v77_v37 }

</bundles_post_ra>
